<compile_context>
chip_gen: v6e
topology: v6e:2x2x1
jax: 0.10.0
libtpu: 0.0.40
codegen_flags: <defaults>
</compile_context>

<pallas_src>
import math
import jax
import jax.numpy as jnp
from jax.experimental import pallas as pl
from jax.experimental.pallas import tpu as pltpu

OUT_LANES = 128  # lane-dense padded width for the final-layer output


def mlp_kernel(obs_ref, act_ref, *refs):
    """refs = (w0_obs, w0_act, b0, w1, b1, ..., w_{L-1}, b_{L-1}, out_ref).

    First layer folds the obs/action concat; ReLU between layers; final layer
    linear.  Last layer's W/b arrive pre-padded to OUT_LANES columns so the
    store into out_ref is lane-dense.
    """
    *param_refs, out_ref = refs

    # Layer 0: split matmul == matmul of the concatenated input.
    h = (jnp.dot(obs_ref[...], param_refs[0][...],
                 preferred_element_type=jnp.float32)
         + jnp.dot(act_ref[...], param_refs[1][...],
                   preferred_element_type=jnp.float32)
         + param_refs[2][...])

    n_rest = (len(param_refs) - 3) // 2
    for i in range(n_rest):
        w = param_refs[3 + 2 * i][...]
        b = param_refs[4 + 2 * i][...]
        h = jnp.maximum(h, 0.0)  # ReLU after every non-final layer
        h = jnp.dot(h, w, preferred_element_type=jnp.float32) + b

    out_ref[...] = h.astype(out_ref.dtype)


def continuous_critic_forward(obs, action, params, *, block_batch=512):
    """params: list of (W, b) with W shape (in, out) (pre-transposed), b (out,)."""
    batch, obs_dim = obs.shape
    act_dim = action.shape[1]
    out_dim = params[-1][0].shape[1]
    n_layers = len(params)

    # --- fold the concat into the first layer: split W0 row-wise ---
    w0, b0 = params[0]
    w0_obs, w0_act = w0[:obs_dim], w0[obs_dim:]

    pad_cols = OUT_LANES - out_dim
    flat = []
    if n_layers == 1:
        # First layer is also the last: pad the split W0 / b0 to OUT_LANES.
        flat += [jnp.pad(w0_obs, ((0, 0), (0, pad_cols))),
                 jnp.pad(w0_act, ((0, 0), (0, pad_cols))),
                 jnp.pad(b0, (0, pad_cols)).reshape(1, -1)]
    else:
        flat += [w0_obs, w0_act, b0.reshape(1, -1)]
        for w, b in params[1:-1]:
            flat += [w, b.reshape(1, -1)]
        w_last, b_last = params[-1]
        flat += [jnp.pad(w_last, ((0, 0), (0, pad_cols))),
                 jnp.pad(b_last, (0, pad_cols)).reshape(1, -1)]

    # --- batch tiling: tile is a multiple of 8 sublanes, capped at block_batch ---
    tb = min(block_batch, max(8, ((batch + 7) // 8) * 8))
    b_pad = pl.cdiv(batch, tb) * tb
    if b_pad != batch:
        obs = jnp.pad(obs, ((0, b_pad - batch), (0, 0)))
        action = jnp.pad(action, ((0, b_pad - batch), (0, 0)))
    grid = (b_pad // tb,)

    def row_spec(cols):
        return pl.BlockSpec((tb, cols), lambda i: (i, 0))

    def const_spec(shape):
        return pl.BlockSpec(shape, lambda i: (0, 0))  # resident across grid steps

    in_specs = [row_spec(obs_dim), row_spec(act_dim)]
    in_specs += [const_spec(p.shape) for p in flat]

    out = pl.pallas_call(
        mlp_kernel,
        out_shape=jax.ShapeDtypeStruct((b_pad, OUT_LANES), jnp.float32),
        grid=grid,
        in_specs=in_specs,
        out_specs=row_spec(OUT_LANES),
        compiler_params=pltpu.CompilerParams(
            dimension_semantics=("parallel",)),
    )(obs, action, *flat)

    return out[:batch, :out_dim]


def init_mlp_params(key, input_dim, mlp_hidden_dim, output_dim, layer_num):
    """Deterministic init mimicking nn.Linear default (U[-1/sqrt(in), 1/sqrt(in)])."""
    params = []
    for idx in range(layer_num):
        i_dim = input_dim if idx == 0 else mlp_hidden_dim
        o_dim = output_dim if idx == layer_num - 1 else mlp_hidden_dim
        key, kw, kb = jax.random.split(key, 3)
        bound = 1.0 / math.sqrt(i_dim)
        # store W already transposed to (in, out)
        w = jax.random.uniform(kw, (i_dim, o_dim), jnp.float32, -bound, bound)
        b = jax.random.uniform(kb, (o_dim,), jnp.float32, -bound, bound)
        params.append((w, b))
    return params


if __name__ == "__main__":
    # Small shapes consistent with the module.
    batch = 8
    obs_dim = 24
    act_dim = 8
    input_dim = obs_dim + act_dim      # torch.cat([obs, action], dim=-1)
    mlp_hidden_dim = 32
    output_dim = 1                     # Q-value
    layer_num = 3

    key = jax.random.PRNGKey(0)
    k_obs, k_act, k_par = jax.random.split(key, 3)
    obs = jax.random.normal(k_obs, (batch, obs_dim), jnp.float32)
    action = jax.random.normal(k_act, (batch, act_dim), jnp.float32)
    params = init_mlp_params(k_par, input_dim, mlp_hidden_dim, output_dim, layer_num)

    out = continuous_critic_forward(obs, action, params)
    out = jax.block_until_ready(out)

    # Pure-JAX reference check (same math as the PyTorch module).
    x = jnp.concatenate([obs, action], axis=-1)
    h = x
    for i, (w, b) in enumerate(params):
        h = h @ w + b
        if i != layer_num - 1:
            h = jnp.maximum(h, 0.0)
    assert out.shape == (batch, output_dim), out.shape
    assert jnp.allclose(out, h, atol=1e-4, rtol=1e-4), float(jnp.max(jnp.abs(out - h)))

    print("KERNEL_OK")
</pallas_src>

<mosaic_0001>
module attributes {stable_mosaic.version = 11 : i64} {
  func.func @mlp_kernel(%arg0: i32, %arg1: memref<8x24xf32, #tpu.memory_space<vmem>>, %arg2: memref<8x8xf32, #tpu.memory_space<vmem>>, %arg3: memref<24x32xf32, #tpu.memory_space<vmem>>, %arg4: memref<8x32xf32, #tpu.memory_space<vmem>>, %arg5: memref<1x32xf32, #tpu.memory_space<vmem>>, %arg6: memref<32x32xf32, #tpu.memory_space<vmem>>, %arg7: memref<1x32xf32, #tpu.memory_space<vmem>>, %arg8: memref<32x128xf32, #tpu.memory_space<vmem>>, %arg9: memref<1x128xf32, #tpu.memory_space<vmem>>, %arg10: memref<8x128xf32, #tpu.memory_space<vmem>>) attributes {dimension_semantics = [#tpu.dimension_semantics<parallel>], iteration_bounds = array<i64: 1>, scalar_prefetch = 0 : i64, scratch_operands = 0 : i64, tpu.core_type = #tpu.core_type<tc>, window_params = [{transform_indices = @transform_0, window_bounds = array<i64: 8, 24>}, {transform_indices = @transform_1, window_bounds = array<i64: 8, 8>}, {pipeline_mode = #tpu.pipeline_mode<synchronous>, transform_indices = @transform_2, window_bounds = array<i64: 24, 32>}, {pipeline_mode = #tpu.pipeline_mode<synchronous>, transform_indices = @transform_3, window_bounds = array<i64: 8, 32>}, {pipeline_mode = #tpu.pipeline_mode<synchronous>, transform_indices = @transform_4, window_bounds = array<i64: 1, 32>}, {pipeline_mode = #tpu.pipeline_mode<synchronous>, transform_indices = @transform_5, window_bounds = array<i64: 32, 32>}, {pipeline_mode = #tpu.pipeline_mode<synchronous>, transform_indices = @transform_6, window_bounds = array<i64: 1, 32>}, {pipeline_mode = #tpu.pipeline_mode<synchronous>, transform_indices = @transform_7, window_bounds = array<i64: 32, 128>}, {pipeline_mode = #tpu.pipeline_mode<synchronous>, transform_indices = @transform_8, window_bounds = array<i64: 1, 128>}, {transform_indices = @transform_9, window_bounds = array<i64: 8, 128>}]} {
    %c0 = arith.constant 0 : index
    %c0_0 = arith.constant 0 : index
    %0 = vector.load %arg1[%c0, %c0_0] : memref<8x24xf32, #tpu.memory_space<vmem>>, vector<8x24xf32>
    %c0_1 = arith.constant 0 : index
    %c0_2 = arith.constant 0 : index
    %1 = vector.load %arg3[%c0_1, %c0_2] : memref<24x32xf32, #tpu.memory_space<vmem>>, vector<24x32xf32>
    %cst = arith.constant dense<0.000000e+00> : vector<8x32xf32>
    %2 = tpu.matmul %0, %1, %cst {dimension_numbers = #tpu.dot_dimension_numbers<[1], [0], [0], [1], [0, 0, 1, 1], [], []>} : vector<8x24xf32>, vector<24x32xf32>, vector<8x32xf32> -> vector<8x32xf32>
    %c0_3 = arith.constant 0 : index
    %c0_4 = arith.constant 0 : index
    %3 = vector.load %arg2[%c0_3, %c0_4] : memref<8x8xf32, #tpu.memory_space<vmem>>, vector<8x8xf32>
    %c0_5 = arith.constant 0 : index
    %c0_6 = arith.constant 0 : index
    %4 = vector.load %arg4[%c0_5, %c0_6] : memref<8x32xf32, #tpu.memory_space<vmem>>, vector<8x32xf32>
    %cst_7 = arith.constant dense<0.000000e+00> : vector<8x32xf32>
    %5 = tpu.matmul %3, %4, %cst_7 {dimension_numbers = #tpu.dot_dimension_numbers<[1], [0], [0], [1], [0, 0, 1, 1], [], []>} : vector<8x8xf32>, vector<8x32xf32>, vector<8x32xf32> -> vector<8x32xf32>
    %6 = arith.addf %2, %5 : vector<8x32xf32>
    %c0_8 = arith.constant 0 : index
    %c0_9 = arith.constant 0 : index
    %7 = vector.load %arg5[%c0_8, %c0_9] : memref<1x32xf32, #tpu.memory_space<vmem>>, vector<1x32xf32>
    %8 = vector.broadcast %7 : vector<1x32xf32> to vector<8x32xf32>
    %9 = arith.addf %6, %8 : vector<8x32xf32>
    %c0_10 = arith.constant 0 : index
    %c0_11 = arith.constant 0 : index
    %10 = vector.load %arg6[%c0_10, %c0_11] : memref<32x32xf32, #tpu.memory_space<vmem>>, vector<32x32xf32>
    %c0_12 = arith.constant 0 : index
    %c0_13 = arith.constant 0 : index
    %11 = vector.load %arg7[%c0_12, %c0_13] : memref<1x32xf32, #tpu.memory_space<vmem>>, vector<1x32xf32>
    %cst_14 = arith.constant 0.000000e+00 : f32
    %12 = vector.broadcast %cst_14 : f32 to vector<8x32xf32>
    %13 = arith.maximumf %9, %12 : vector<8x32xf32>
    %cst_15 = arith.constant dense<0.000000e+00> : vector<8x32xf32>
    %14 = tpu.matmul %13, %10, %cst_15 {dimension_numbers = #tpu.dot_dimension_numbers<[1], [0], [0], [1], [0, 0, 1, 1], [], []>} : vector<8x32xf32>, vector<32x32xf32>, vector<8x32xf32> -> vector<8x32xf32>
    %15 = vector.broadcast %11 : vector<1x32xf32> to vector<8x32xf32>
    %16 = arith.addf %14, %15 : vector<8x32xf32>
    %c0_16 = arith.constant 0 : index
    %c0_17 = arith.constant 0 : index
    %17 = vector.load %arg8[%c0_16, %c0_17] : memref<32x128xf32, #tpu.memory_space<vmem>>, vector<32x128xf32>
    %c0_18 = arith.constant 0 : index
    %c0_19 = arith.constant 0 : index
    %18 = vector.load %arg9[%c0_18, %c0_19] : memref<1x128xf32, #tpu.memory_space<vmem>>, vector<1x128xf32>
    %cst_20 = arith.constant 0.000000e+00 : f32
    %19 = vector.broadcast %cst_20 : f32 to vector<8x32xf32>
    %20 = arith.maximumf %16, %19 : vector<8x32xf32>
    %cst_21 = arith.constant dense<0.000000e+00> : vector<8x128xf32>
    %21 = tpu.matmul %20, %17, %cst_21 {dimension_numbers = #tpu.dot_dimension_numbers<[1], [0], [0], [1], [0, 0, 1, 1], [], []>} : vector<8x32xf32>, vector<32x128xf32>, vector<8x128xf32> -> vector<8x128xf32>
    %22 = vector.broadcast %18 : vector<1x128xf32> to vector<8x128xf32>
    %23 = arith.addf %21, %22 : vector<8x128xf32>
    %c0_22 = arith.constant 0 : index
    %c0_23 = arith.constant 0 : index
    %24 = vector.load %arg10[%c0_22, %c0_23] : memref<8x128xf32, #tpu.memory_space<vmem>>, vector<8x128xf32>
    tpu.vector_store %arg10[%c0_22, %c0_23], %23 {strides = array<i32>} : memref<8x128xf32, #tpu.memory_space<vmem>>, vector<8x128xf32>,
    return
  }
  func.func @transform_0(%arg0: i32) -> (i32, i32) {
    %c0_i32 = arith.constant 0 : i32
    %c0_i32_0 = arith.constant 0 : i32
    return %arg0, %c0_i32 : i32, i32
  }
  func.func @transform_1(%arg0: i32) -> (i32, i32) {
    %c0_i32 = arith.constant 0 : i32
    %c0_i32_0 = arith.constant 0 : i32
    return %arg0, %c0_i32 : i32, i32
  }
  func.func @transform_2(%arg0: i32) -> (i32, i32) {
    %c0_i32 = arith.constant 0 : i32
    %c0_i32_0 = arith.constant 0 : i32
    %c0_i32_1 = arith.constant 0 : i32
    return %c0_i32, %c0_i32_0 : i32, i32
  }
  func.func @transform_3(%arg0: i32) -> (i32, i32) {
    %c0_i32 = arith.constant 0 : i32
    %c0_i32_0 = arith.constant 0 : i32
    %c0_i32_1 = arith.constant 0 : i32
    return %c0_i32, %c0_i32_0 : i32, i32
  }
  func.func @transform_4(%arg0: i32) -> (i32, i32) {
    %c0_i32 = arith.constant 0 : i32
    %c0_i32_0 = arith.constant 0 : i32
    %c0_i32_1 = arith.constant 0 : i32
    return %c0_i32, %c0_i32_0 : i32, i32
  }
  func.func @transform_5(%arg0: i32) -> (i32, i32) {
    %c0_i32 = arith.constant 0 : i32
    %c0_i32_0 = arith.constant 0 : i32
    %c0_i32_1 = arith.constant 0 : i32
    return %c0_i32, %c0_i32_0 : i32, i32
  }
  func.func @transform_6(%arg0: i32) -> (i32, i32) {
    %c0_i32 = arith.constant 0 : i32
    %c0_i32_0 = arith.constant 0 : i32
    %c0_i32_1 = arith.constant 0 : i32
    return %c0_i32, %c0_i32_0 : i32, i32
  }
  func.func @transform_7(%arg0: i32) -> (i32, i32) {
    %c0_i32 = arith.constant 0 : i32
    %c0_i32_0 = arith.constant 0 : i32
    %c0_i32_1 = arith.constant 0 : i32
    return %c0_i32, %c0_i32_0 : i32, i32
  }
  func.func @transform_8(%arg0: i32) -> (i32, i32) {
    %c0_i32 = arith.constant 0 : i32
    %c0_i32_0 = arith.constant 0 : i32
    %c0_i32_1 = arith.constant 0 : i32
    return %c0_i32, %c0_i32_0 : i32, i32
  }
  func.func @transform_9(%arg0: i32) -> (i32, i32) {
    %c0_i32 = arith.constant 0 : i32
    %c0_i32_0 = arith.constant 0 : i32
    return %arg0, %c0_i32 : i32, i32
  }
}

</mosaic_0001>

<bundles_post_ra>
// kernel: tpu_custom_call.1
= control target key start
LH: loop header
LB: loop body
LE: loop exit
PB: predicated region body
PF: predicated region fallthrough
CT: control target
= control target key end

     0   :  { %14 = vsyncpa [#allocation3], 0  ;;  %s778_s0 = inlined_call_operand.hbm [shape: f32[8,24], index: 0, kind: input, shape index: {}]   ;;  %s779_s1 = inlined_call_operand.hbm [shape: f32[8,8], index: 1, kind: input, shape index: {}]   ;;  %s780_s2 = inlined_call_operand.hbm [shape: f32[24,32], index: 2, kind: input, shape index: {}]   ;;  %s781_s3 = inlined_call_operand.hbm [shape: f32[8,32], index: 3, kind: input, shape index: {}]   ;;  %s782_s4 = inlined_call_operand.vmem [shape: f32[1,32], index: 4, kind: input, shape index: {}]   ;;  %s783_s5 = inlined_call_operand.hbm [shape: f32[32,32], index: 5, kind: input, shape index: {}]   ;;  %s784_s6 = inlined_call_operand.vmem [shape: f32[1,32], index: 6, kind: input, shape index: {}]   ;;  %s785_s7 = inlined_call_operand.hbm [shape: f32[32,128], index: 7, kind: input, shape index: {}]   ;;  %s786_s8 = inlined_call_operand.vmem [shape: f32[1,128], index: 8, kind: input, shape index: {}]   ;;  %s787_s9 = inlined_call_operand.hbm [shape: f32[8,128], index: 9, kind: output, shape index: {}]  }
   0x1   :  { %15 = vsyncpa [#allocation6], 0 }
   0x2   :  { %16 = vsyncpa [#allocation9], 0 }
   0x3   :  { %17 = vsyncpa [#allocation12], 0 }
   0x4   :  { %18 = vsyncpa [#allocation4], 0  ;;  %s681_s30 = smov [#allocation5]   ;;  %s682_s11 = smov [#allocation8]  }
   0x5   :  { %s35_s10 = sshll.u32 %s681_s30, 4  ;;  %s57_s12 = sshll.u32 %s682_s11, 4  ;;  %s36_s10 = int_to_ptr.vmem [resolvable:$true] %s35_s10  ;;  %s58_s12 = int_to_ptr.vmem [resolvable:$true] %s57_s12 }
   0x6   :  { %s539_s13 = scalar_lea.vmem %s36_s10, 128  ;;  %p544_p1 = scmp.lt.s32.totalorder %s36_s10, %s36_s10 }
   0x7   :  { %p540_p0 = scmp.ne.s32.totalorder %s36_s10, %s539_s13  ;;  %p545_p2 = scmp.lt.s32.totalorder %s539_s13, %s539_s13 }
   0x9   :  { %p546_p3 = por %p545_p2, %p544_p1 }
   0xb   :  { %p547_p4 = pnand %p546_p3, %p540_p0 }
   0xd   :  { %550 = shalt.err (!%p547_p4)
}
   0xe   :  { %38 = dma.hbm_to_vmem [thread:$0]  %s779_s1, 128, %s36_s10, [#allocation6]  }
   0xf   :  { %s559_s16 = scalar_lea.vmem %s58_s12, 128  ;;  %p564_p6 = scmp.lt.s32.totalorder %s58_s12, %s58_s12 }
  0x10   :  { %p560_p5 = scmp.ne.s32.totalorder %s58_s12, %s559_s16  ;;  %p565_p7 = scmp.lt.s32.totalorder %s559_s16, %s559_s16 }
  0x12   :  { %p566_p8 = por %p565_p7, %p564_p6 }
  0x14   :  { %p567_p9 = pnand %p566_p8, %p560_p5 }
  0x16   :  { %570 = shalt.err (!%p567_p9)
}
  0x17   :  { %60 = dma.hbm_to_vmem [thread:$0]  %s781_s3, 128, %s58_s12, [#allocation9]  }
  0x18   :  { %s683_s19 = smov [#allocation2]   ;;  %s684_s21 = smov [#allocation7]  }
  0x19   :  { %s25_s20 = sshll.u32 %s683_s19, 4  ;;  %s44_s22 = sshll.u32 %s684_s21, 4  ;;  %s26_s20 = int_to_ptr.vmem [resolvable:$true] %s25_s20  ;;  %s45_s22 = int_to_ptr.vmem [resolvable:$true] %s44_s22 }
  0x1a   :  { %s579_s23 = scalar_lea.vmem %s26_s20, 128  ;;  %p584_p11 = scmp.lt.s32.totalorder %s26_s20, %s26_s20 }
  0x1b   :  { %p580_p10 = scmp.ne.s32.totalorder %s26_s20, %s579_s23  ;;  %p585_p12 = scmp.lt.s32.totalorder %s579_s23, %s579_s23 }
  0x1d   :  { %p586_p13 = por %p585_p12, %p584_p11 }
  0x1f   :  { %p587_p0 = pnand %p586_p13, %p580_p10 }
  0x21   :  { %590 = shalt.err (!%p587_p0)
}
  0x22   :  { %28 = dma.hbm_to_vmem [thread:$0]  %s778_s0, 128, %s26_s20, [#allocation3]  }
  0x23   :  { %s599_s25 = scalar_lea.vmem %s45_s22, 384  ;;  %p604_p2 = scmp.lt.s32.totalorder %s45_s22, %s45_s22 }
  0x24   :  { %p600_p1 = scmp.ne.s32.totalorder %s45_s22, %s599_s25  ;;  %p605_p3 = scmp.lt.s32.totalorder %s599_s25, %s599_s25 }
  0x26   :  { %p606_p4 = por %p605_p3, %p604_p2 }
  0x28   :  { %p607_p5 = pnand %p606_p4, %p600_p1 }
  0x2a   :  { %610 = shalt.err (!%p607_p5)
}
  0x2b   :  { %s685_s3 = smov 128   ;;  %s686_s26 = smov 8  }
  0x2c   :  { %50 = dma.hbm_to_vmem [thread:$0]  %s780_s2, 384, %s45_s22, [#allocation6], %s685_s3, %s685_s3, %s686_s26  }
  0x2d   :  { %s687_s29 = smov [#allocation10]   ;;  %s688_s10 = smov [#allocation11]  }
  0x2e   :  { %s68_s30 = sshll.u32 %s687_s29, 4  ;;  %s82_s11 = sshll.u32 %s688_s10, 4  ;;  %s69_s30 = int_to_ptr.vmem [resolvable:$true] %s68_s30  ;;  %s83_s11 = int_to_ptr.vmem [resolvable:$true] %s82_s11 }
  0x2f   :  { %s619_s0 = scalar_lea.vmem %s69_s30, 512  ;;  %p624_p7 = scmp.lt.s32.totalorder %s69_s30, %s69_s30 }
  0x30   :  { %p620_p6 = scmp.ne.s32.totalorder %s69_s30, %s619_s0  ;;  %p625_p8 = scmp.lt.s32.totalorder %s619_s0, %s619_s0 }
  0x32   :  { %p626_p9 = por %p625_p8, %p624_p7 }
  0x34   :  { %p627_p10 = pnand %p626_p9, %p620_p6 }
  0x36   :  { %630 = shalt.err (!%p627_p10)
}
  0x37   :  { %74 = dma.hbm_to_vmem [thread:$0]  %s783_s5, 512, %s69_s30, [#allocation9], %s685_s3, %s685_s3, %s686_s26  }
  0x38   :  { %s639_s14 = scalar_lea.vmem %s83_s11, 512  ;;  %p644_p12 = scmp.lt.s32.totalorder %s83_s11, %s83_s11 }
  0x39   :  { %p640_p11 = scmp.ne.s32.totalorder %s83_s11, %s639_s14  ;;  %p645_p13 = scmp.lt.s32.totalorder %s639_s14, %s639_s14 }
  0x3b   :  { %p646_p0 = por %p645_p13, %p644_p12 }
  0x3d   :  { %p647_p1 = pnand %p646_p0, %p640_p11 }
  0x3f   :  { %650 = shalt.err (!%p647_p1)
}
  0x40   :  { %88 = dma.hbm_to_vmem [thread:$0]  %s785_s7, 512, %s83_s11, [#allocation12], %s685_s3, %s685_s3, %s686_s26  }
  0x41   :  { %671 = dma.done.wait [#allocation3], 128  }
  0x42   :  { %672 = vsyncadd [#allocation3], 4294967168 }
  0x43   :  { %673 = dma.done.wait [#allocation6], 512  }
  0x44   :  { %674 = vsyncadd [#allocation6], 4294966784 }
  0x45   :  { %675 = dma.done.wait [#allocation9], 640  }
  0x46   :  { %676 = vsyncadd [#allocation9], 4294966656 }
  0x47   :  { %677 = dma.done.wait [#allocation12], 512  }
  0x48   :  { %678 = vsyncadd [#allocation12], 4294966784  ;;  %v689_v0 = vmov 0.0   ;;  %vm690_vm0 = vmmov 0   ;;  %vm115_vm1 = vcmask 64512   ;;  %v112_v1 = vld [vmem:[#allocation7 + $0x10] sm:$0xff] }
  0x49   :  { %489 = vmatprep.subr.mxu1 %v689_v0  ;;  %484 = vmatprep.subr.mxu0 %v689_v0  ;;  %v114_v2 = vld [vmem:[#allocation8] sm:$0xff]  ;;  %v111_v3 = vld [vmem:[#allocation7 + $0x8] sm:$0xff]  ;;  %v110_v5 = vld [vmem:[#allocation7] sm:$0xff]  ;;  %vm189_vm2 = vcmask 195584   ;;  %vm283_vm3 = vcmask 261120   ;;  %s691_s19 = smov [#allocation13]  }
  0x4a   :  { %486 = vmatprep.mubr.msk.f32.mxu0 %vm690_vm0, %v689_v0  ;;  %495 = vmatprep.mubr.msk.f32.mxu1 %vm690_vm0, %v689_v0  ;;  %v113_v4 = vld [vmem:[#allocation5] sm:$0xff]  ;;  %v109_v6 = vld [vmem:[#allocation2] sm:$0xff]  ;;  %v272_v9 = vld [vmem:[#allocation10 + $0x8] sm:$0xff]  ;;  %s449_s20 = sshll.u32 %s691_s19, 4  ;;  %s450_s20 = int_to_ptr.vmem [resolvable:$true] %s449_s20 }
  0x4b   :  { %490 = vmatpush3.msra.mxu1 %v112_v1  ;;  %485 = vmatpush3.msra.mxu0 %v114_v2  ;;  %v274_v7 = vld [vmem:[#allocation10 + $0x18] sm:$0xff]  ;;  %v273_v8 = vld [vmem:[#allocation10 + $0x10] sm:$0xff]  ;;  %v271_v10 = vld [vmem:[#allocation10] sm:$0xff]  ;;  %s651_s21 = scalar_lea.vmem %s450_s20, 128  ;;  %p656_p3 = scmp.lt.s32.totalorder %s450_s20, %s450_s20 }
  0x4c   :  { %491 = vmatprep.subr.mxu1 %v689_v0  ;;  %487 = vmatmul.mubr.msk.f32.vlgmr.msra.gmra.mxu0 %vm115_vm1, %v113_v4  ;;  %v360_v11 = vld [vmem:[#allocation11 + $0x18] sm:$0xff]  ;;  %v463_v15 = vld [vmem:[%s782_s4] ss:$0 sm:$0xff]  ;;  %v358_v21 = vld [vmem:[#allocation11 + $0x8] sm:$0xff]  ;;  %p652_p2 = scmp.ne.s32.totalorder %s450_s20, %s651_s21  ;;  %p657_p4 = scmp.lt.s32.totalorder %s651_s21, %s651_s21 }
  0x4d   :  { %492 = vmatpush3.msra.mxu1 %v111_v3  ;;  %498 = vmatprep.subr.mxu0 %v689_v0  ;;  %v359_v20 = vld [vmem:[#allocation11 + $0x10] sm:$0xff]  ;;  %v357_v22 = vld [vmem:[#allocation11] sm:$0xff] }
  0x4e   :  { %493 = vmatprep.subr.mxu1 %v689_v0  ;;  %506 = vmatprep.mubr.msk.f32.mxu0 %vm690_vm0, %v689_v0  ;;  %v464_v23 = vld [vmem:[%s784_s6] ss:$0 sm:$0xff]  ;;  %p658_p5 = por %p657_p4, %p656_p3 }
  0x4f   :  { %494 = vmatpush3.msra.mxu1 %v110_v5  ;;  %499 = vmatpush3.msra.mxu0 %v274_v7  ;;  %v466_v28 = vld [vmem:[%s786_s8] ss:$0 sm:$0xff] }
  0x50   :  { %496 = vmatmul.mubr.msk.f32.vlgmr.msra.gmra.mxu1 %vm189_vm2, %v109_v6  ;;  %509 = vmatprep.subr.mxu1 %v689_v0  ;;  %p659_p6 = pnand %p658_p5, %p652_p2 }
  0x51   :  { %517 = vmatprep.mubr.msk.f32.mxu1 %vm690_vm0, %v689_v0  ;;  %500 = vmatprep.subr.mxu0 %v689_v0 }
  0x52   :  { %501 = vmatpush3.msra.mxu0 %v273_v8  ;;  %510 = vmatpush3.msra.mxu1 %v360_v11 }
  0x53   :  { %502 = vmatprep.subr.mxu0 %v689_v0  ;;  %511 = vmatprep.subr.mxu1 %v689_v0 }
  0x54   :  { %503 = vmatpush3.msra.mxu0 %v272_v9  ;;  %512 = vmatpush3.msra.mxu1 %v359_v20 }
  0x55   :  { %504 = vmatprep.subr.mxu0 %v689_v0  ;;  %513 = vmatprep.subr.mxu1 %v689_v0 }
  0x56   :  { %505 = vmatpush3.msra.mxu0 %v271_v10  ;;  %514 = vmatpush3.msra.mxu1 %v358_v21 }
  0x57   :  { %515 = vmatprep.subr.mxu1 %v689_v0 }
  0x58   :  { %516 = vmatpush3.msra.mxu1 %v357_v22 }
 0x10c   :  { %v185_v12 = vpop.f32.mrf.mxu0 }
 0x10e   :  { %v488_v13 = vpop.f32.mrf.mxu0 }
 0x110   :  { %v259_v14 = vpop.f32.mrf.mxu1 }
 0x111   :  { %v260_v16 = vadd.f32 %v259_v14, %v185_v12 }
 0x112   :  { %v497_v17 = vpop.f32.mrf.mxu1 }
 0x113   :  { %v270_v18 = vadd.f32 %v463_v15, %v260_v16 }
 0x115   :  { %v276_v19 = vmax.f32 %v270_v18, 0.0 }
 0x117   :  { %507 = vmatmul.mubr.msk.f32.vlgmr.msra.gmra.mxu0 %vm283_vm3, %v276_v19 }
 0x1d7   :  { %v353_v24 = vpop.f32.mrf.mxu0 }
 0x1d8   :  { %v354_v25 = vadd.f32 %v464_v23, %v353_v24 }
 0x1d9   :  { %v508_v26 = vpop.f32.mrf.mxu0 }
 0x1da   :  { %v362_v27 = vmax.f32 %v354_v25, 0.0 }
 0x1dc   :  { %518 = vmatmul.mubr.msk.f32.vlgmr.msra.gmra.mxu1 %vm283_vm3, %v362_v27 }
 0x29c   :  { %v438_v29 = vpop.f32.mrf.mxu1 }
 0x29d   :  { %v439_v30 = vadd.f32 %v466_v28, %v438_v29 }
 0x29e   :  { %v519_v31 = vpop.f32.mrf.mxu1 }
 0x29f   :  { %442 = vst [vmem:[#allocation13] sm:$0xff] %v439_v30 }
 0x2a0   :  { %662 = shalt.err (!%p659_p6)
}
 0x2a1   :  { %452 = dma.vmem_to_hbm [thread:$0]  %s450_s20, 128, %s787_s9, [#allocation4]  }
 0x2a2   :  { %679 = dma.done.wait [#allocation4], 128  }
 0x2a3   :  { %680 = vsyncadd [#allocation4], 4294967168 }
 0x2a4   :  { %456 = vsyncpa [#allocation3], 1 }
 0x2a5   :  { %457 = vsyncpa [#allocation6], 1 }
 0x2a6   :  { %458 = vsyncpa [#allocation9], 1 }
 0x2a7   :  { %459 = vsyncpa [#allocation12], 1 }
 0x2a8   :  { %460 = vsyncpa [#allocation4], 1 }

</bundles_post_ra>
